<compile_context>
chip_gen: v6e
topology: v6e:2x2x1
jax: 0.10.0
libtpu: 0.0.40
codegen_flags: <defaults>
</compile_context>

<pallas_src>
import functools

import jax
import jax.numpy as jnp
from jax.experimental import pallas as pl
from jax.experimental.pallas import tpu as pltpu

_MIB = 1024 * 1024


def _round_up(v: int, m: int) -> int:
    return ((v + m - 1) // m) * m


def _vmem_capacity_bytes() -> int:
    try:
        return int(pltpu.get_tpu_info().vmem_capacity_bytes)
    except Exception:
        return 64 * _MIB  # conservative (v7x per-TensorCore capacity)


def _supports_bf16_vpu() -> bool:
    # v5e/v5p/v4 and older lack a bf16 VALU; v6e/v7x have it.
    try:
        kind = jax.devices()[0].device_kind.lower()
    except Exception:
        return False
    return not any(t in kind for t in ("v2", "v3", "v4", "v5"))


def _max_margin_kernel(md_col_ref, md_row_ref, x_ref, out_ref, *,
                       n: int, tm: int, lane_reduce: bool, compute_dtype):
    i = pl.program_id(0)

    x = x_ref[...].astype(compute_dtype)        # (tm, n) row block
    md_i = md_col_ref[...]                      # (tm, 1): margin + diag for these rows
    md_j = md_row_ref[...]                      # (1, n):  margin + full diag (columns)

    zero = jnp.zeros((), dtype=compute_dtype)
    # relu(margin + d[i] - x[i,j]) + relu(margin + d[j] - x[i,j]); accumulate in f32.
    contrib = (jnp.maximum(md_i - x, zero)
               + jnp.maximum(md_j - x, zero)).astype(jnp.float32)

    # Mask rows past n (last block may extend beyond the array). Select (not
    # multiply) so stale/NaN padding is safe; mask BEFORE any reduction.
    row = jax.lax.broadcasted_iota(jnp.int32, (tm, 1), 0) + i * tm
    contrib = jnp.where(row < n, contrib, 0.0)

    if lane_reduce:
        # n % 128 == 0: lane-wise partial sums only (no cross-lane reduce, no
        # iota/select lane mask, lane-dense unmasked store). Wrapper finishes.
        out_ref[...] = contrib.reshape(-1, 128).sum(axis=0, keepdims=True)
    else:
        total = jnp.sum(contrib)                # scalar partial for this block
        lane = jax.lax.broadcasted_iota(jnp.int32, (1, 128), 1)
        out_ref[...] = jnp.where(lane == 0, total, jnp.float32(0.0))


def max_margin_ranking_loss_distance(x: jax.Array, margin: float = 1.0,
                                     tm: int | None = None) -> jax.Array:
    """Pallas TPU implementation of MaxMarginRankingLoss_Distance.forward."""
    n = x.shape[0]
    assert x.shape == (n, n), "input must be a square (n, n) similarity matrix"

    itemsize = jnp.dtype(x.dtype).itemsize
    align = {4: 8, 2: 16, 1: 32}.get(itemsize, 8)

    # ---- Generation-aware VMEM budgets -------------------------------------
    cap = _vmem_capacity_bytes()
    if cap >= 96 * _MIB:                 # v5e / v6e: 128 MiB physical VMEM
        vmem_limit = 100 * _MIB
    else:                                # v7x: 64 MiB per TensorCore
        vmem_limit = 48 * _MIB
    # Per-row working-set bytes: 2 pipelined x buffers + ~2 block-sized f32
    # temporaries (compute/accumulation intermediates).
    per_row_bytes = n * (2 * itemsize + 8)
    budget_bytes = vmem_limit - 4 * _MIB

    tm_auto = tm is None
    if tm_auto:
        tm = (budget_bytes // max(1, per_row_bytes)) // align * align
        # Keep at least ~4 row blocks when n is large enough: restores
        # pipelining overlap and lets both v7x TensorCores participate.
        if n >= 4 * align:
            tm = min(tm, (n // 4) // align * align)
        tm = max(align, tm)
        if tm >= n:
            tm = n                       # single full-extent block (always legal)
    nb = pl.cdiv(n, tm)

    # Prefer an even block count so the two v7x TensorCores split evenly.
    if tm_auto and nb > 1 and nb % 2 == 1:
        tm2 = max(align, _round_up(-(-n // (nb + 1)), align))
        nb2 = -(-n // tm2)
        if nb2 % 2 == 0 and tm2 <= tm:
            tm, nb = tm2, nb2

    # Guard very wide rows: even a minimum-height block must fit the limit.
    # TODO(synk): add a column-tile grid dimension if a single aligned row
    # block of width n ever exceeds physical VMEM (n in the millions).
    block_bytes = tm * n * itemsize
    vmem_limit = max(vmem_limit, 2 * block_bytes + tm * n * 4 + 4 * _MIB)

    # ---- Compute dtype: bf16 VPU path on v6e/v7x, f32 elsewhere -------------
    compute_dtype = jnp.float32
    if x.dtype == jnp.bfloat16 and _supports_bf16_vpu():
        compute_dtype = jnp.bfloat16

    # Precompute margin + diag once in the wrapper (f32, then compute dtype).
    diag = jnp.diagonal(x).astype(jnp.float32)
    md = (jnp.float32(margin) + diag).astype(compute_dtype)
    md_col = md.reshape(n, 1)
    md_row = md.reshape(1, n)

    lane_reduce = (n % 128 == 0)

    kernel = functools.partial(_max_margin_kernel, n=n, tm=tm,
                               lane_reduce=lane_reduce,
                               compute_dtype=compute_dtype)

    cost = pl.CostEstimate(
        flops=6 * n * n,
        transcendentals=0,
        bytes_accessed=n * n * itemsize + 8 * n + nb * 512,
    )

    partials = pl.pallas_call(
        kernel,
        out_shape=jax.ShapeDtypeStruct((nb, 128), jnp.float32),
        grid=(nb,),
        in_specs=[
            pl.BlockSpec((tm, 1), lambda i: (i, 0)),   # margin+diag slice (rows)
            pl.BlockSpec((1, n), lambda i: (0, 0)),    # margin+diag, full (cols)
            pl.BlockSpec((tm, n), lambda i: (i, 0)),   # streamed row block of x
        ],
        out_specs=pl.BlockSpec((1, 128), lambda i: (i, 0)),
        compiler_params=pltpu.CompilerParams(
            dimension_semantics=("parallel",),          # independent row blocks
            vmem_limit_bytes=int(vmem_limit),
        ),
        cost_estimate=cost,
    )(md_col, md_row, x)

    return jnp.sum(partials) / jnp.float32(2 * n * n)


def _reference(x: jax.Array, margin: float = 1.0) -> jax.Array:
    """Plain-JAX transcription of the PyTorch forward, for verification."""
    n = x.shape[0]
    x = x.astype(jnp.float32)
    x1 = jnp.diag(x)[:, None]
    x1 = jnp.broadcast_to(x1, (n, n)).reshape(-1, 1)
    x1 = jnp.concatenate((x1, x1), axis=0)
    x2 = x.reshape(-1, 1)
    x3 = x.T.reshape(-1, 1)
    x2 = jnp.concatenate((x2, x3), axis=0)
    return jnp.mean(jnp.maximum(margin + (x1 - x2), 0.0))


if __name__ == "__main__":
    key = jax.random.PRNGKey(0)

    # 1) Small square similarity matrix, as the module expects.
    n = 8
    x = jax.random.normal(key, (n, n), dtype=jnp.float32)
    loss = jax.block_until_ready(max_margin_ranking_loss_distance(x, margin=1.0))
    ref = _reference(x, margin=1.0)
    assert jnp.allclose(loss, ref, rtol=1e-5, atol=1e-5), (loss, ref)

    # 2) Multi-block / ragged-tail masking path (n not a multiple of tm or 128).
    n2 = 20
    x2 = jax.random.normal(jax.random.PRNGKey(1), (n2, n2), dtype=jnp.float32)
    loss2 = jax.block_until_ready(
        max_margin_ranking_loss_distance(x2, margin=1.0, tm=8))
    ref2 = _reference(x2, margin=1.0)
    assert jnp.allclose(loss2, ref2, rtol=1e-5, atol=1e-5), (loss2, ref2)

    # 3) Lane-dense per-lane-partial epilogue + multi-block auto tiling (n%128==0).
    n3 = 256
    x3 = jax.random.normal(jax.random.PRNGKey(2), (n3, n3), dtype=jnp.float32)
    loss3 = jax.block_until_ready(max_margin_ranking_loss_distance(x3, margin=1.0))
    ref3 = _reference(x3, margin=1.0)
    assert jnp.allclose(loss3, ref3, rtol=1e-5, atol=1e-5), (loss3, ref3)

    # 4) bf16 input path (bf16 VPU compute on v6e/v7x, f32 fallback on v5e).
    x4 = jax.random.normal(jax.random.PRNGKey(3), (n3, n3),
                           dtype=jnp.float32).astype(jnp.bfloat16)
    loss4 = jax.block_until_ready(max_margin_ranking_loss_distance(x4, margin=1.0))
    ref4 = _reference(x4, margin=1.0)
    assert jnp.allclose(loss4, ref4, rtol=2e-2, atol=2e-2), (loss4, ref4)

    print("KERNEL_OK")
</pallas_src>

<mosaic_0001>
module attributes {stable_mosaic.version = 11 : i64} {
  func.func @_max_margin_kernel(%arg0: i32, %arg1: memref<8x1xf32, #tpu.memory_space<vmem>>, %arg2: memref<1x8xf32, #tpu.memory_space<vmem>>, %arg3: memref<8x8xf32, #tpu.memory_space<vmem>>, %arg4: memref<1x128xf32, #tpu.memory_space<vmem>>) attributes {dimension_semantics = [#tpu.dimension_semantics<parallel>], iteration_bounds = array<i64: 1>, scalar_prefetch = 0 : i64, scratch_operands = 0 : i64, tpu.core_type = #tpu.core_type<tc>, window_params = [{transform_indices = @transform_0, window_bounds = array<i64: 8, 1>}, {pipeline_mode = #tpu.pipeline_mode<synchronous>, transform_indices = @transform_1, window_bounds = array<i64: 1, 8>}, {transform_indices = @transform_2, window_bounds = array<i64: 8, 8>}, {transform_indices = @transform_3, window_bounds = array<i64: 1, 128>}]} {
    %c0 = arith.constant 0 : index
    %c0_0 = arith.constant 0 : index
    %0 = vector.load %arg3[%c0, %c0_0] : memref<8x8xf32, #tpu.memory_space<vmem>>, vector<8x8xf32>
    %c0_1 = arith.constant 0 : index
    %c0_2 = arith.constant 0 : index
    %1 = vector.load %arg1[%c0_1, %c0_2] : memref<8x1xf32, #tpu.memory_space<vmem>>, vector<8x1xf32>
    %c0_3 = arith.constant 0 : index
    %c0_4 = arith.constant 0 : index
    %2 = vector.load %arg2[%c0_3, %c0_4] : memref<1x8xf32, #tpu.memory_space<vmem>>, vector<1x8xf32>
    %3 = vector.broadcast %1 : vector<8x1xf32> to vector<8x8xf32>
    %4 = arith.subf %3, %0 : vector<8x8xf32>
    %cst = arith.constant 0.000000e+00 : f32
    %5 = vector.broadcast %cst : f32 to vector<8x8xf32>
    %6 = arith.maximumf %4, %5 : vector<8x8xf32>
    %7 = vector.broadcast %2 : vector<1x8xf32> to vector<8x8xf32>
    %8 = arith.subf %7, %0 : vector<8x8xf32>
    %cst_5 = arith.constant 0.000000e+00 : f32
    %9 = vector.broadcast %cst_5 : f32 to vector<8x8xf32>
    %10 = arith.maximumf %8, %9 : vector<8x8xf32>
    %11 = arith.addf %6, %10 : vector<8x8xf32>
    %12 = tpu.iota {dimensions = array<i32: 0>} : vector<8x1xi32>
    %c8_i32 = arith.constant 8 : i32
    %13 = arith.muli %arg0, %c8_i32 : i32
    %14 = vector.broadcast %13 : i32 to vector<8x1xi32>
    %15 = arith.addi %12, %14 : vector<8x1xi32>
    %c8_i32_6 = arith.constant 8 : i32
    %16 = vector.broadcast %c8_i32_6 : i32 to vector<8x1xi32>
    %17 = arith.cmpi slt, %15, %16 : vector<8x1xi32>
    %cst_7 = arith.constant 0.000000e+00 : f32
    %18 = vector.shape_cast %17 : vector<8x1xi1> to vector<8x1xi1>
    %19 = vector.broadcast %18 : vector<8x1xi1> to vector<8x8xi1>
    %20 = vector.broadcast %cst_7 : f32 to vector<8x8xf32>
    %21 = arith.select %19, %11, %20 : vector<8x8xi1>, vector<8x8xf32>
    %22 = vector.shape_cast %21 : vector<8x8xf32> to vector<1x8x8xf32>
    %cst_8 = arith.constant dense<0.000000e+00> : vector<1xf32>
    %23 = vector.multi_reduction <add>, %22, %cst_8 [1, 2] : vector<1x8x8xf32> to vector<1xf32>
    %24 = vector.shape_cast %23 : vector<1xf32> to vector<1x1x1xf32>
    %25 = vector.extract %24[0, 0, 0] : f32 from vector<1x1x1xf32>
    %26 = tpu.iota {dimensions = array<i32: 1>} : vector<1x128xi32>
    %c0_i32 = arith.constant 0 : i32
    %27 = vector.broadcast %c0_i32 : i32 to vector<1x128xi32>
    %28 = arith.cmpi eq, %26, %27 : vector<1x128xi32>
    %cst_9 = arith.constant 0.000000e+00 : f32
    %29 = vector.broadcast %25 : f32 to vector<1x128xf32>
    %30 = vector.broadcast %cst_9 : f32 to vector<1x128xf32>
    %31 = arith.select %28, %29, %30 : vector<1x128xi1>, vector<1x128xf32>
    %c0_10 = arith.constant 0 : index
    %c0_11 = arith.constant 0 : index
    %32 = vector.load %arg4[%c0_10, %c0_11] : memref<1x128xf32, #tpu.memory_space<vmem>>, vector<1x128xf32>
    tpu.vector_store %arg4[%c0_10, %c0_11], %31 {strides = array<i32>} : memref<1x128xf32, #tpu.memory_space<vmem>>, vector<1x128xf32>,
    return
  }
  func.func @transform_0(%arg0: i32) -> (i32, i32) {
    %c0_i32 = arith.constant 0 : i32
    %c0_i32_0 = arith.constant 0 : i32
    return %arg0, %c0_i32 : i32, i32
  }
  func.func @transform_1(%arg0: i32) -> (i32, i32) {
    %c0_i32 = arith.constant 0 : i32
    %c0_i32_0 = arith.constant 0 : i32
    %c0_i32_1 = arith.constant 0 : i32
    return %c0_i32, %c0_i32_0 : i32, i32
  }
  func.func @transform_2(%arg0: i32) -> (i32, i32) {
    %c0_i32 = arith.constant 0 : i32
    %c0_i32_0 = arith.constant 0 : i32
    return %arg0, %c0_i32 : i32, i32
  }
  func.func @transform_3(%arg0: i32) -> (i32, i32) {
    %c0_i32 = arith.constant 0 : i32
    %c0_i32_0 = arith.constant 0 : i32
    return %arg0, %c0_i32 : i32, i32
  }
}

</mosaic_0001>

<bundles_post_ra>
// kernel: tpu_custom_call.1
= control target key start
LH: loop header
LB: loop body
LE: loop exit
PB: predicated region body
PF: predicated region fallthrough
CT: control target
= control target key end

     0   :  { %v102_v1 = vmov 0   ;;  %s136_s0 = inlined_call_operand.vmem [shape: f32[8,1], index: 0, kind: input, shape index: {}]   ;;  %s137_s1 = inlined_call_operand.vmem [shape: f32[1,8], index: 1, kind: input, shape index: {}]   ;;  %s138_s2 = inlined_call_operand.vmem [shape: f32[8,8], index: 2, kind: input, shape index: {}]   ;;  %s139_s3 = inlined_call_operand.hbm [shape: f32[1,128], index: 3, kind: output, shape index: {}]  }
   0x1   :  { %v16_v0 = vld [vmem:[%s136_s0] sm:$0xff]  ;;  %79 = vset.pattern.permute.xlu0 %v102_v1 }
   0x2   :  { %8 = vsyncpa [#allocation3], 0  ;;  %20 = vperm.xlu0 %79, %v16_v0   ;;  %v74_v2 = vld [vmem:[%s137_s1] ss:$0 sm:$0xff]  ;;  %vm43_vm0 = vcmask 64512   ;;  %v54_v18 = vlaneseq  ;;  %s103_s0 = smov [#allocation2]  }
   0x3   :  { %v15_v3 = vld [vmem:[%s138_s2] sm:$0xff]  ;;  %s66_s1 = sshll.u32 %s103_s0, 4  ;;  %s67_s1 = int_to_ptr.vmem [resolvable:$true] %s66_s1 }
   0x4   :  { %v31_v4 = vsub.f32 %v74_v2, %v15_v3  ;;  %v55_v19 = vand.u32 127, %v54_v18  ;;  %s80_s18 = scalar_lea.vmem %s67_s1, 16  ;;  %s84_s19 = scalar_lea.vmem %s67_s1, 32 }
   0x5   :  { %p81_p0 = scmp.ne.s32.totalorder %s67_s1, %s80_s18  ;;  %p85_p1 = scmp.lt.s32.totalorder %s67_s1, %s67_s1 }
   0x6   :  { %v32_v7 = vmax.f32 %v31_v4, 0.0  ;;  %vm56_vm1 = vcmp.eq.s32.totalorder %v55_v19, 0  ;;  %p86_p2 = scmp.lt.s32.totalorder %s84_s19, %s80_s18 }
   0x8   :  { %p87_p3 = por %p86_p2, %p85_p1 }
   0xa   :  { %p88_p4 = pnand %p87_p3, %p81_p0 }
  0x7d   :  { %v21_v5 = vpop.permute.xlu0 %20 }
  0x7e   :  { %v23_v6 = vsub.f32 %v21_v5, %v15_v3 }
  0x80   :  { %v24_v8 = vmax.f32 %v23_v6, 0.0 }
  0x82   :  { %v33_v9 = vadd.f32 %v32_v7, %v24_v8 }
  0x84   :  { %v44_v10 = vsel %vm43_vm0, %v33_v9, 0.0 }
  0x85   :  { %45 = vadd.xlane.f32.xlu0 %v44_v10 }
 0x10e   :  { %v46_v11 = vpop.xlane.xlu0 %45 }
 0x10f   :  { %v47_v12 = vrot.slane %v46_v11, 4 }
 0x111   :  { %v48_v13 = vadd.f32 %v47_v12, %v46_v11 }
 0x113   :  { %v49_v14 = vrot.slane %v48_v13, 2 }
 0x115   :  { %v50_v15 = vadd.f32 %v49_v14, %v48_v13 }
 0x117   :  { %v51_v16 = vrot.slane %v50_v15, 1 }
 0x119   :  { %v52_v17 = vadd.f32 %v51_v16, %v50_v15 }
 0x11b   :  { %75 = vpush %v52_v17 }
 0x14c   :  { %s76_s2 = spop %75 }
 0x14d   :  { %v57_v20 = vstv %s76_s2 }
 0x14e   :  { %v58_v21 = vsel %vm56_vm1, %v57_v20, 0.0 }
 0x14f   :  { %59 = vst [vmem:[#allocation2] sm:$0x1] %v58_v21 }
 0x150   :  { %91 = shalt.err (!%p88_p4)
}
 0x151   :  { %69 = dma.vmem_to_hbm [thread:$0]  %s67_s1, 16, %s139_s3, [#allocation3]  }
 0x152   :  { %100 = dma.done.wait [#allocation3], 16  }
 0x153   :  { %101 = vsyncadd [#allocation3], 4294967280 }
 0x154   :  { %73 = vsyncpa [#allocation3], 1 }

</bundles_post_ra>
